<compile_context>
chip_gen: v7x
topology: tpu7x:2x2x1
jax: 0.10.0
libtpu: 0.0.40
codegen_flags: <defaults>
</compile_context>

<pallas_src>
import functools

import jax
import jax.numpy as jnp
from jax.experimental import pallas as pl
from jax.experimental.pallas import tpu as pltpu


def _paco_row_kernel(lab_col_ref, lab_row_ref, feat_a_ref, feat_all_ref,
                     sup_ref, loss_ref, *, alpha, beta, gamma, inv_supt,
                     inv_temp, loss_scale, row_tile):
    """One tile of `row_tile` anchor rows against the full contrast set."""
    f32 = jnp.float32
    tm = row_tile
    C = sup_ref.shape[1]

    r0 = pl.multiple_of(pl.program_id(0) * tm, tm)   # global row offset

    # Anchor block; fold 1/temperature into the small (tm, D) operand.
    feat_a = feat_a_ref[...]
    if inv_temp != 1.0:
        feat_a = feat_a * inv_temp
    feat_all = feat_all_ref[...]

    # anchor . contrast^T without materializing a transpose (MXU, f32 acc).
    adc = jax.lax.dot_general(
        feat_a, feat_all,
        dimension_numbers=(((1,), (1,)), ((), ())),
        preferred_element_type=f32)                         # (tm, ss)

    sup = sup_ref[...].astype(f32)
    if inv_supt != 1.0:
        sup = sup * inv_supt                                # (tm, C)

    # Row max over the concatenated [sup | adc] logits (numerical stability).
    row_max = jnp.maximum(jnp.max(sup, axis=1, keepdims=True),
                          jnp.max(adc, axis=1, keepdims=True))   # (tm, 1)

    lab_col = lab_col_ref[...]                              # (tm, 1) int32
    lab_row = lab_row_ref[...]                              # (1, ss) int32
    label_eq = lab_col == lab_row                           # (tm, ss) bool
    label_eq_sum = jnp.sum(label_eq.astype(f32), axis=1, keepdims=True)

    # Self-contrast (diagonal) logits for this tile's rows, computed as a
    # row-wise dot on a tm-row slice of features (cheap, no (tm, ss) iota).
    feat_diag = feat_all_ref[pl.ds(r0, tm), :]              # (tm, D)
    diag_adc = jnp.sum(feat_a.astype(f32) * feat_diag.astype(f32),
                       axis=1, keepdims=True)               # (tm, 1)
    diag_logit = diag_adc - row_max

    logits_sup = sup - row_max
    exp_sum = jnp.sum(jnp.exp(logits_sup), axis=1, keepdims=True)

    if gamma == 0.0:
        # Denominator has no contrastive contribution: skip exp over (tm, ss)
        # and compute sum(label_eq * (adc - row_max)) algebraically.
        con_pos = (jnp.sum(jnp.where(label_eq, adc, 0.0), axis=1, keepdims=True)
                   - label_eq_sum * row_max)
    else:
        logits_con = adc - row_max
        exp_con_sum = jnp.sum(jnp.exp(logits_con), axis=1, keepdims=True)
        exp_sum = exp_sum + gamma * (exp_con_sum - jnp.exp(diag_logit))
        con_pos = jnp.sum(jnp.where(label_eq, logits_con, 0.0),
                          axis=1, keepdims=True)

    # Remove the self-contrast entry from the positive set.
    con_pos = con_pos - diag_logit

    log_denom = jnp.log(exp_sum + 1e-12)                    # (tm, 1)

    # sum(one_hot * logits_sup) == logits_sup at the ground-truth class.
    class_ids = jax.lax.broadcasted_iota(jnp.int32, (tm, C), 1)
    sup_pos = jnp.sum(jnp.where(class_ids == lab_col, logits_sup, 0.0),
                      axis=1, keepdims=True)                # (tm, 1)

    # mask.sum(1) = beta * 1 + alpha * (#same-label - diagonal)
    mask_sum = beta + alpha * (label_eq_sum - 1.0)
    # (mask * log_prob).sum(1) without materializing log_prob.
    numer = beta * sup_pos + alpha * con_pos - mask_sum * log_denom
    mean_log_prob_pos = numer / mask_sum

    loss_ref[...] = (-loss_scale * mean_log_prob_pos).astype(loss_ref.dtype)


def _round_up(x, m):
    return ((x + m - 1) // m) * m


def paco_loss(features, labels, sup_logits, *, K=128, num_classes=1000,
              alpha=1.0, beta=1.0, gamma=0.0, supt=1.0, temperature=1.0,
              base_temperature=None, row_tile=128,
              compute_dtype=jnp.bfloat16, vmem_limit_bytes=None):
    """JAX/Pallas equivalent of PaCoLoss.forward (self_sup=False, sup=False)."""
    base_temperature = temperature if base_temperature is None else base_temperature
    ss, d = features.shape
    bs = (ss - K) // 2
    assert sup_logits.shape == (bs, num_classes)

    tm = _round_up(min(row_tile, _round_up(bs, 8)), 8)
    bs_pad = _round_up(bs, tm)
    assert bs_pad <= ss, "padded anchor rows must stay within the contrast set"
    n_tiles = bs_pad // tm

    feats_c = features.astype(compute_dtype)      # bf16 into the MXU by default
    feat_anchor = feats_c[:bs]
    lab_anchor = labels[:bs].astype(jnp.int32)
    sup = sup_logits.astype(jnp.float32)
    if bs_pad != bs:
        pad = bs_pad - bs
        feat_anchor = jnp.pad(feat_anchor, ((0, pad), (0, 0)))
        lab_anchor = jnp.pad(lab_anchor, (0, pad))
        sup = jnp.pad(sup, ((0, pad), (0, 0)))

    lab_col = lab_anchor.reshape(bs_pad, 1)
    lab_row = labels.astype(jnp.int32).reshape(1, ss)

    kernel = functools.partial(
        _paco_row_kernel,
        alpha=float(alpha), beta=float(beta), gamma=float(gamma),
        inv_supt=1.0 / float(supt), inv_temp=1.0 / float(temperature),
        loss_scale=float(temperature) / float(base_temperature),
        row_tile=tm)

    grid_spec = pltpu.PrefetchScalarGridSpec(
        num_scalar_prefetch=0,
        grid=(n_tiles,),
        in_specs=[
            pl.BlockSpec((tm, 1), lambda i: (i, 0)),            # anchor labels
            pl.BlockSpec((1, ss), lambda i: (0, 0)),            # all labels (resident)
            pl.BlockSpec((tm, d), lambda i: (i, 0)),            # anchor features
            pl.BlockSpec((ss, d), lambda i: (0, 0)),            # all features (resident)
            pl.BlockSpec((tm, num_classes), lambda i: (i, 0)),  # sup logits
        ],
        out_specs=pl.BlockSpec((tm, 1), lambda i: (i, 0)),      # per-row loss
    )

    cp_kwargs = dict(dimension_semantics=("parallel",))
    if vmem_limit_bytes is not None:
        cp_kwargs["vmem_limit_bytes"] = int(vmem_limit_bytes)

    per_row = pl.pallas_call(
        kernel,
        out_shape=jax.ShapeDtypeStruct((bs_pad, 1), jnp.float32),
        grid_spec=grid_spec,
        compiler_params=pltpu.CompilerParams(**cp_kwargs),
    )(lab_col, lab_row, feat_anchor, feats_c, sup)

    return jnp.mean(per_row[:bs, 0])


def paco_loss_ref(features, labels, sup_logits, *, K, num_classes, alpha, beta,
                  gamma, supt, temperature, base_temperature=None):
    """Pure-JAX reference mirroring the PyTorch code (self_sup=False, sup=False)."""
    base_temperature = temperature if base_temperature is None else base_temperature
    features = features.astype(jnp.float32)
    ss = features.shape[0]
    bs = (ss - K) // 2
    labels = labels.reshape(-1, 1)
    mask = (labels[:bs] == labels.T).astype(jnp.float32)                  # (bs, ss)
    adc = jnp.matmul(features[:bs], features.T,
                     precision=jax.lax.Precision.HIGHEST) / temperature   # (bs, ss)
    adc = jnp.concatenate([sup_logits / supt, adc], axis=1)
    logits = adc - jnp.max(adc, axis=1, keepdims=True)
    logits_mask = jnp.ones((bs, ss)).at[jnp.arange(bs), jnp.arange(bs)].set(0.0)
    mask = mask * logits_mask
    one_hot = jax.nn.one_hot(labels[:bs].reshape(-1), num_classes, dtype=jnp.float32)
    mask = jnp.concatenate([one_hot * beta, mask * alpha], axis=1)
    logits_mask = jnp.concatenate([jnp.ones((bs, num_classes)),
                                   gamma * logits_mask], axis=1)
    exp_logits = jnp.exp(logits) * logits_mask
    log_prob = logits - jnp.log(exp_logits.sum(1, keepdims=True) + 1e-12)
    mean_log_prob_pos = (mask * log_prob).sum(1) / mask.sum(1)
    loss = -(temperature / base_temperature) * mean_log_prob_pos
    return loss.mean()


if __name__ == "__main__":
    def run_check(bs, K, D, C, hp, compute_dtype, row_tile, tol, seed=0):
        ss = 2 * bs + K
        key = jax.random.PRNGKey(seed)
        kf, kl, ks = jax.random.split(key, 3)
        features = jax.random.normal(kf, (ss, D), dtype=jnp.float32)
        features = features / jnp.linalg.norm(features, axis=1, keepdims=True)
        labels = jax.random.randint(kl, (ss,), 0, C, dtype=jnp.int32)
        sup_logits = jax.random.normal(ks, (bs, C), dtype=jnp.float32)

        out = paco_loss(features, labels, sup_logits, K=K, num_classes=C,
                        compute_dtype=compute_dtype, row_tile=row_tile, **hp)
        out = jax.block_until_ready(out)
        ref = paco_loss_ref(features, labels, sup_logits, K=K, num_classes=C, **hp)
        assert jnp.allclose(out, ref, rtol=tol, atol=tol), (hp, out, ref)

    hp0 = dict(alpha=1.0, beta=1.0, gamma=0.0, supt=1.0,
               temperature=0.2, base_temperature=0.2)

    # 1) f32 MXU path, multi-tile grid (bs=16, row_tile=8): exact-math check.
    run_check(16, 16, 32, 16, hp0, jnp.float32, 8, 1e-3)

    # 2) Performance path: bf16 features into the MXU (looser tolerance).
    run_check(16, 16, 32, 16, hp0, jnp.bfloat16, 8, 3e-2)

    # 3) gamma != 0 branch + non-divisible bs (12 -> padded to 16) + scales.
    hp1 = dict(alpha=0.7, beta=1.3, gamma=0.5, supt=0.9,
               temperature=0.1, base_temperature=0.3)
    run_check(12, 8, 32, 16, hp1, jnp.float32, 8, 1e-3)

    print("KERNEL_OK")
</pallas_src>

<mosaic_0001>
module attributes {stable_mosaic.version = 11 : i64} {
  func.func @_paco_row_kernel(%arg0: i32, %arg1: memref<8x1xi32, #tpu.memory_space<vmem>>, %arg2: memref<1x48xi32, #tpu.memory_space<vmem>>, %arg3: memref<8x32xf32, #tpu.memory_space<vmem>>, %arg4: memref<48x32xf32, #tpu.memory_space<vmem>>, %arg5: memref<8x16xf32, #tpu.memory_space<vmem>>, %arg6: memref<8x1xf32, #tpu.memory_space<vmem>>) attributes {dimension_semantics = [#tpu.dimension_semantics<parallel>], iteration_bounds = array<i64: 2>, scalar_prefetch = 0 : i64, scratch_operands = 0 : i64, tpu.core_type = #tpu.core_type<tc>, window_params = [{transform_indices = @transform_0, window_bounds = array<i64: 8, 1>}, {pipeline_mode = #tpu.pipeline_mode<synchronous>, transform_indices = @transform_1, window_bounds = array<i64: 1, 48>}, {transform_indices = @transform_2, window_bounds = array<i64: 8, 32>}, {pipeline_mode = #tpu.pipeline_mode<synchronous>, transform_indices = @transform_3, window_bounds = array<i64: 48, 32>}, {transform_indices = @transform_4, window_bounds = array<i64: 8, 16>}, {transform_indices = @transform_5, window_bounds = array<i64: 8, 1>}]} {
    %c8_i32 = arith.constant 8 : i32
    %0 = arith.muli %arg0, %c8_i32 : i32
    %1 = tpu.assume_multiple %0, 8 : i32
    %c0 = arith.constant 0 : index
    %c0_0 = arith.constant 0 : index
    %2 = vector.load %arg3[%c0, %c0_0] : memref<8x32xf32, #tpu.memory_space<vmem>>, vector<8x32xf32>
    %cst = arith.constant 5.000000e+00 : f32
    %3 = vector.broadcast %cst : f32 to vector<8x32xf32>
    %4 = arith.mulf %2, %3 : vector<8x32xf32>
    %c0_1 = arith.constant 0 : index
    %c0_2 = arith.constant 0 : index
    %5 = vector.load %arg4[%c0_1, %c0_2] : memref<48x32xf32, #tpu.memory_space<vmem>>, vector<48x32xf32>
    %cst_3 = arith.constant dense<0.000000e+00> : vector<8x48xf32>
    %6 = tpu.matmul %4, %5, %cst_3 {dimension_numbers = #tpu.dot_dimension_numbers<[1], [1], [0], [0], [0, 0, 1, 0], [], []>} : vector<8x32xf32>, vector<48x32xf32>, vector<8x48xf32> -> vector<8x48xf32>
    %c0_4 = arith.constant 0 : index
    %c0_5 = arith.constant 0 : index
    %7 = vector.load %arg5[%c0_4, %c0_5] : memref<8x16xf32, #tpu.memory_space<vmem>>, vector<8x16xf32>
    %cst_6 = arith.constant dense<0xFF800000> : vector<8xf32>
    %8 = vector.multi_reduction <maximumf>, %7, %cst_6 [1] : vector<8x16xf32> to vector<8xf32>
    %9 = vector.shape_cast %8 : vector<8xf32> to vector<8x1xf32>
    %cst_7 = arith.constant dense<0xFF800000> : vector<8xf32>
    %10 = vector.multi_reduction <maximumf>, %6, %cst_7 [1] : vector<8x48xf32> to vector<8xf32>
    %11 = vector.shape_cast %10 : vector<8xf32> to vector<8x1xf32>
    %12 = arith.maximumf %9, %11 : vector<8x1xf32>
    %c0_8 = arith.constant 0 : index
    %c0_9 = arith.constant 0 : index
    %13 = vector.load %arg1[%c0_8, %c0_9] : memref<8x1xi32, #tpu.memory_space<vmem>>, vector<8x1xi32>
    %c0_10 = arith.constant 0 : index
    %c0_11 = arith.constant 0 : index
    %14 = vector.load %arg2[%c0_10, %c0_11] : memref<1x48xi32, #tpu.memory_space<vmem>>, vector<1x48xi32>
    %15 = vector.broadcast %13 : vector<8x1xi32> to vector<8x48xi32>
    %16 = vector.broadcast %14 : vector<1x48xi32> to vector<8x48xi32>
    %17 = arith.cmpi eq, %15, %16 : vector<8x48xi32>
    %18 = arith.extui %17 : vector<8x48xi1> to vector<8x48xi32>
    %19 = arith.sitofp %18 : vector<8x48xi32> to vector<8x48xf32>
    %cst_12 = arith.constant dense<0.000000e+00> : vector<8xf32>
    %20 = vector.multi_reduction <add>, %19, %cst_12 [1] : vector<8x48xf32> to vector<8xf32>
    %21 = vector.shape_cast %20 : vector<8xf32> to vector<8x1xf32>
    %22 = arith.index_cast %1 : i32 to index
    %c0_13 = arith.constant 0 : index
    %23 = vector.load %arg4[%22, %c0_13] : memref<48x32xf32, #tpu.memory_space<vmem>>, vector<8x32xf32>
    %24 = arith.mulf %4, %23 : vector<8x32xf32>
    %cst_14 = arith.constant dense<0.000000e+00> : vector<8xf32>
    %25 = vector.multi_reduction <add>, %24, %cst_14 [1] : vector<8x32xf32> to vector<8xf32>
    %26 = vector.shape_cast %25 : vector<8xf32> to vector<8x1xf32>
    %27 = arith.subf %26, %12 : vector<8x1xf32>
    %28 = vector.broadcast %12 : vector<8x1xf32> to vector<8x16xf32>
    %29 = arith.subf %7, %28 : vector<8x16xf32>
    %30 = math.exp %29 : vector<8x16xf32>
    %cst_15 = arith.constant dense<0.000000e+00> : vector<8xf32>
    %31 = vector.multi_reduction <add>, %30, %cst_15 [1] : vector<8x16xf32> to vector<8xf32>
    %32 = vector.shape_cast %31 : vector<8xf32> to vector<8x1xf32>
    %cst_16 = arith.constant 0.000000e+00 : f32
    %33 = vector.broadcast %cst_16 : f32 to vector<8x48xf32>
    %34 = arith.select %17, %6, %33 : vector<8x48xi1>, vector<8x48xf32>
    %cst_17 = arith.constant dense<0.000000e+00> : vector<8xf32>
    %35 = vector.multi_reduction <add>, %34, %cst_17 [1] : vector<8x48xf32> to vector<8xf32>
    %36 = vector.shape_cast %35 : vector<8xf32> to vector<8x1xf32>
    %37 = arith.mulf %21, %12 : vector<8x1xf32>
    %38 = arith.subf %36, %37 : vector<8x1xf32>
    %39 = arith.subf %38, %27 : vector<8x1xf32>
    %cst_18 = arith.constant 9.99999996E-13 : f32
    %40 = vector.broadcast %cst_18 : f32 to vector<8x1xf32>
    %41 = arith.addf %32, %40 : vector<8x1xf32>
    %42 = math.log %41 : vector<8x1xf32>
    %43 = tpu.iota {dimensions = array<i32: 1>} : vector<8x16xi32>
    %44 = vector.broadcast %13 : vector<8x1xi32> to vector<8x16xi32>
    %45 = arith.cmpi eq, %43, %44 : vector<8x16xi32>
    %cst_19 = arith.constant 0.000000e+00 : f32
    %46 = vector.broadcast %cst_19 : f32 to vector<8x16xf32>
    %47 = arith.select %45, %29, %46 : vector<8x16xi1>, vector<8x16xf32>
    %cst_20 = arith.constant dense<0.000000e+00> : vector<8xf32>
    %48 = vector.multi_reduction <add>, %47, %cst_20 [1] : vector<8x16xf32> to vector<8xf32>
    %49 = vector.shape_cast %48 : vector<8xf32> to vector<8x1xf32>
    %cst_21 = arith.constant 1.000000e+00 : f32
    %50 = vector.broadcast %cst_21 : f32 to vector<8x1xf32>
    %51 = arith.subf %21, %50 : vector<8x1xf32>
    %cst_22 = arith.constant 1.000000e+00 : f32
    %52 = vector.broadcast %cst_22 : f32 to vector<8x1xf32>
    %53 = arith.mulf %52, %51 : vector<8x1xf32>
    %cst_23 = arith.constant 1.000000e+00 : f32
    %54 = vector.broadcast %cst_23 : f32 to vector<8x1xf32>
    %55 = arith.addf %54, %53 : vector<8x1xf32>
    %cst_24 = arith.constant 1.000000e+00 : f32
    %56 = vector.broadcast %cst_24 : f32 to vector<8x1xf32>
    %57 = arith.mulf %56, %49 : vector<8x1xf32>
    %cst_25 = arith.constant 1.000000e+00 : f32
    %58 = vector.broadcast %cst_25 : f32 to vector<8x1xf32>
    %59 = arith.mulf %58, %39 : vector<8x1xf32>
    %60 = arith.addf %57, %59 : vector<8x1xf32>
    %61 = arith.mulf %55, %42 : vector<8x1xf32>
    %62 = arith.subf %60, %61 : vector<8x1xf32>
    %63 = arith.divf %62, %55 : vector<8x1xf32>
    %cst_26 = arith.constant -1.000000e+00 : f32
    %64 = vector.broadcast %cst_26 : f32 to vector<8x1xf32>
    %65 = arith.mulf %64, %63 : vector<8x1xf32>
    %c0_27 = arith.constant 0 : index
    %c0_28 = arith.constant 0 : index
    %66 = vector.load %arg6[%c0_27, %c0_28] : memref<8x1xf32, #tpu.memory_space<vmem>>, vector<8x1xf32>
    tpu.vector_store %arg6[%c0_27, %c0_28], %65 {strides = array<i32>} : memref<8x1xf32, #tpu.memory_space<vmem>>, vector<8x1xf32>,
    return
  }
  func.func @transform_0(%arg0: i32) -> (i32, i32) {
    %c0_i32 = arith.constant 0 : i32
    %c0_i32_0 = arith.constant 0 : i32
    return %arg0, %c0_i32 : i32, i32
  }
  func.func @transform_1(%arg0: i32) -> (i32, i32) {
    %c0_i32 = arith.constant 0 : i32
    %c0_i32_0 = arith.constant 0 : i32
    %c0_i32_1 = arith.constant 0 : i32
    return %c0_i32, %c0_i32_0 : i32, i32
  }
  func.func @transform_2(%arg0: i32) -> (i32, i32) {
    %c0_i32 = arith.constant 0 : i32
    %c0_i32_0 = arith.constant 0 : i32
    return %arg0, %c0_i32 : i32, i32
  }
  func.func @transform_3(%arg0: i32) -> (i32, i32) {
    %c0_i32 = arith.constant 0 : i32
    %c0_i32_0 = arith.constant 0 : i32
    %c0_i32_1 = arith.constant 0 : i32
    return %c0_i32, %c0_i32_0 : i32, i32
  }
  func.func @transform_4(%arg0: i32) -> (i32, i32) {
    %c0_i32 = arith.constant 0 : i32
    %c0_i32_0 = arith.constant 0 : i32
    return %arg0, %c0_i32 : i32, i32
  }
  func.func @transform_5(%arg0: i32) -> (i32, i32) {
    %c0_i32 = arith.constant 0 : i32
    %c0_i32_0 = arith.constant 0 : i32
    return %arg0, %c0_i32 : i32, i32
  }
}

</mosaic_0001>

<bundles_post_ra>
// kernel: tpu_custom_call.1
= control target key start
LH: loop header
LB: loop body
LE: loop exit
PB: predicated region body
PF: predicated region fallthrough
CT: control target
= control target key end

     0   :  { %s617_s18 = smov 0   ;;  %s692_s0 = inlined_call_operand.vmem [shape: s32[16,1], index: 0, kind: input, shape index: {}]   ;;  %s693_s1 = inlined_call_operand.vmem [shape: s32[1,48], index: 1, kind: input, shape index: {}]   ;;  %s694_s2 = inlined_call_operand.vmem [shape: f32[16,32], index: 2, kind: input, shape index: {}]   ;;  %s695_s3 = inlined_call_operand.vmem [shape: f32[48,32], index: 3, kind: input, shape index: {}]   ;;  %s696_s4 = inlined_call_operand.vmem [shape: f32[16,16], index: 4, kind: input, shape index: {}]   ;;  %s697_s5 = inlined_call_operand.vmem [shape: f32[16,1], index: 5, kind: output, shape index: {}]  }
   0x1 LB: > { %s623_s19 = sadd.s32 4294967295, %s581_s18   ;;  %p503_p0 = scmp.ge.s32.totalorder %s581_s18, 1  ;;  %s581_s18 = sphi %s617_s18, %s15_s18  }
   0x2   : > { %p204_p1 = scmp.lt.s32.totalorder %s581_s18, 3 }
   0x4   : > { %p205_p2 = pnand %p503_p0, %p204_p1 }
   0x5   : > { %v257_v0 = vld [vmem:[%s695_s3] sm:$0xff] (!%p205_p2)  ;;  %v258_v1 = vld [vmem:[%s695_s3 + $0x8] sm:$0xff] (!%p205_p2)  ;;  %vm263_vm0 = vcmask (!%p205_p2), 261120   ;;  %v583_v2 = vmov (!%p205_p2), 0.0|0.0   ;;  %p238_p3 = scmp.lt.s32.totalorder (!%p205_p2), %s623_s19, 1  ;;  %vm584_vm2 = vmmov (!%p205_p2), 0   ;;  %v403_v30 = vlaneseq (!%p205_p2) }
   0x6   : > { %208 = sbr.rel (%p205_p2) target bundleno = 570 (0x23a), region = 40  ;;  %543 = vmatprep.subr.bf16.mxu0 (!%p205_p2), %v583_v2  ;;  %v544_v3 = vpack.c.bf16 (!%p205_p2), %v258_v1, %v257_v0  ;;  %vm635_vm1 = vmpackc.low (!%p205_p2), %vm263_vm0, %vm263_vm0  ;;  %v585_v5 = vmov (!%p205_p2), 0.0   ;;  %v586_v6 = vmov (!%p205_p2), 0   ;;  %v259_v7 = vld [vmem:[%s695_s3 + $0x10] sm:$0xff] (!%p205_p2)  ;;  %v260_v8 = vld [vmem:[%s695_s3 + $0x18] sm:$0xff] (!%p205_p2)  ;;  %vm356_vm3 = vcmask (!%p205_p2), 130048  }
   0x7   : > { %540 = vmatprep.mubr.msk.f32.mxu0 (!%p205_p2), %vm584_vm2, %v585_v5  ;;  %567 = vset.pattern.permute.xlu1 (!%p205_p2), %v586_v6  ;;  %v548_v9 = vpack.c.bf16 (!%p205_p2), %v260_v8, %v259_v7  ;;  %v261_v13 = vld [vmem:[%s695_s3 + $0x20] sm:$0xff] (!%p205_p2)  ;;  %v262_v14 = vld [vmem:[%s695_s3 + $0x28] sm:$0xff] (!%p205_p2)  ;;  %s508_s20 = sshll.u32 (!%p205_p2), %s623_s19, 3  ;;  %vm360_vm4 = vcmask (!%p205_p2), 392192   ;;  %v404_v32 = vand.u32 (!%p205_p2), 127, %v403_v30  ;;  %vm418_vm7 = vcmask (!%p205_p2), 7168  }
   0x8   : > { %546 = vmatpush3.bf16.xpose.msk.msra.mxu0 (!%p205_p2), %vm635_vm1, %v544_v3  ;;  %568 = vset.pattern.permute.xlu0 (!%p205_p2), %v586_v6  ;;  %v552_v15 = vpack.c.bf16 (!%p205_p2), %v262_v14, %v261_v13  ;;  %v516_v18 = vld [vmem:[%s693_s1] ss:$0 sm:$0xff] (!%p205_p2)  ;;  %s380_s25 = scalar_lea.vmem (!%p205_p2), %s695_s3, %s508_s20 }
   0x9   : > { %547 = vmatprep.subr.bf16.mxu0 (!%p205_p2), %v583_v2  ;;  %v381_v22 = vld [vmem:[%s380_s25] sm:$0xff] (!%p205_p2) }
   0xd   : > { %s239_s24 = scalar_select %p238_p3, %s623_s19, 1 }
   0xf   : > { %s649_s29 = sshll.u32 %s239_s24, 3 }
  0x10   : > { %s241_s7 = scalar_lea.vmem %s692_s0, %s649_s29  ;;  %s249_s10 = scalar_lea.vmem %s696_s4, %s649_s29  ;;  %550 = vmatpush3.bf16.xpose.msk.msra.mxu0 %vm635_vm1, %v548_v9 }
  0x11   : > { %v365_v10 = vld [vmem:[%s241_s7] sm:$0xff]  ;;  %551 = vmatprep.subr.bf16.mxu0 %v583_v2  ;;  %s245_s17 = scalar_lea.vmem %s694_s2, %s649_s29  ;;  %s253_s27 = scalar_lea.vmem %s697_s5, %s649_s29 }
  0x12   : > { %v355_v11 = vld [vmem:[%s249_s10] sm:$0xff]  ;;  %368 = vperm.xlu1 %567, %v365_v10  }
  0x13   : > { %v357_v12 = vsel %vm356_vm3, %v355_v11, -inf  ;;  %v255_v16 = vld [vmem:[%s245_s17] sm:$0xff] }
  0x14   : > { %358 = vmax.xlane.f32.xlu0 %v357_v12  ;;  %v256_v17 = vmul.f32 5.0, %v255_v16 }
  0x16   : > { %v382_v26 = vmul.f32 %v381_v22, %v256_v17 }
  0x18   : > { %554 = vmatpush3.bf16.xpose.msk.msra.mxu0 %vm635_vm1, %v552_v15  ;;  %v383_v27 = vsel %vm263_vm0, %v382_v26, 0.0 }
  0x1f   : > { %541 = vmatmul.mubr.msk.f32.vlgmr.msra.gmra.mrb[0].mxu0 %vm263_vm0, %v256_v17 }
  0x91   : > { %v369_v19 = vpop.permute.xlu1 %368 }
  0x92   : > { %vm374_vm5 = vcmp.eq.s32.totalorder %v369_v19, %v516_v18  ;;  %vm405_vm6 = vcmp.eq.s32.totalorder %v404_v32, %v369_v19 }
  0x93   : > { %v517_v21 = vsel %vm374_vm5, 1.0, %v585_v5 }
  0x94   : > { %v377_v25 = vsel %vm360_vm4, %v517_v21, 0.0 }
  0xa1   : > { %v359_v31 = vpop.xlane.xlu0 %358 }
  0xf2   : > { %v351_v20 = vpop.f32.mrb[0].mxu0 }
  0xf3   : > { %v542_v23 = vpop.f32.mrb[1].mxu0  ;;  %v361_v24 = vsel %vm360_vm4, %v351_v20, -inf  ;;  %v393_v28 = vsel %vm374_vm5, %v351_v20, 0.0 }
  0xf4   : > { %362 = vmax.xlane.f32.xlu0 %v361_v24  ;;  %v394_v29 = vsel %vm360_vm4, %v393_v28, 0.0 }
  0xf8   : > { %378 = vadd.xlane.f32.xlu0 %v377_v25 }
  0xfc   : > { %384 = vadd.xlane.f32.xlu0 %v383_v27 }
 0x100   : > { %395 = vadd.xlane.f32.xlu0 %v394_v29 }
 0x181   : > { %v363_v33 = vpop.xlane.xlu0 %362 }
 0x182   : > { %v364_v34 = vmax.f32 %v359_v31, %v363_v33 }
 0x184   : > { %v387_v35 = vsub.f32 %v355_v11, %v364_v34 }
 0x185   : > { %v379_v41 = vpop.xlane.xlu0 %378 }
 0x186   : > { %v388_v36 = vmul.f32 1.442695, %v387_v35  ;;  %v406_v37 = vsel %vm405_vm6, %v387_v35, 0.0  ;;  %v518_v42 = vadd.f32 -1.0, %v379_v41  ;;  %v397_v48 = vmul.f32 %v379_v41, %v364_v34 }
 0x187   : > { %v407_v38 = vsel %vm356_vm3, %v406_v37, 0.0 }
 0x188   : > { %569 = vpow2.f32 %v388_v36  ;;  %408 = vadd.xlane.f32.xlu0 %v407_v38  ;;  %v411_v46 = vadd.f32 1.0, %v518_v42 }
 0x189   : > { %v385_v44 = vpop.xlane.xlu0 %384 }
 0x18a   : > { %v386_v50 = vsub.f32 %v385_v44, %v364_v34 }
 0x18d   : > { %v396_v47 = vpop.xlane.xlu0 %395 }
 0x18e   : > { %v398_v49 = vsub.f32 %v396_v47, %v397_v48 }
 0x190   : > { %v399_v53 = vsub.f32 %v398_v49, %v386_v50 }
 0x192   : > { %v570_v39 = vpop.eup %569 }
 0x193   : > { %v390_v40 = vsel %vm356_vm3, %v570_v39, 0.0 }
 0x194   : > { %391 = vadd.xlane.f32.xlu1 %v390_v40 }
 0x215   : > { %v409_v52 = vpop.xlane.xlu0 %408 }
 0x216   : > { %v412_v55 = vadd.f32 %v409_v52, %v399_v53 }
 0x221   : > { %v392_v43 = vpop.xlane.xlu1 %391 }
 0x222   : > { %v400_v45 = vadd.f32 1e-12, %v392_v43 }
 0x224   : > { %571 = vlog2.f32 %v400_v45 }
 0x225   : > { %573 = vrcp.f32 %v411_v46 }
 0x22e   : > { %v572_v51 = vpop.eup %571 }
 0x22f   : > { %v402_v54 = vmul.f32 0.6931472, %v572_v51  ;;  %v574_v57 = vpop.eup %573 }
 0x231   : > { %v413_v56 = vmul.f32 %v411_v46, %v402_v54 }
 0x233   : > { %v414_v58 = vsub.f32 %v412_v55, %v413_v56 }
 0x235   : > { %v416_v59 = vmul.f32 %v574_v57, %v414_v58 }
 0x237   : > { %v417_v60 = vmul.f32 -1.0, %v416_v59 }
 0x239   : > { %419 = vst.msk [vmem:[%s253_s27] sm:$0xff] %vm418_vm7, %v417_v60 }
 0x23a PF: > { %s15_s18 = sadd.s32 1, %s581_s18  }
 0x23b   : > { %p12_p4 = scmp.ge.s32.totalorder %s15_s18, 4  }
 0x23d   :  { %14 = sbr.rel (!%p12_p4) target bundleno = 1 (0x1), region = 77 }

</bundles_post_ra>
